<compile_context>
chip_gen: v5e
topology: v5e:2x2
jax: 0.10.0
libtpu: 0.0.40
codegen_flags: <defaults>
</compile_context>

<pallas_src>
import jax
import jax.numpy as jnp
from jax.experimental import pallas as pl
from jax.experimental.pallas import tpu as pltpu


def add_pos_embs_kernel(x_ref, pe_ref, o_ref):
    # x_ref / pe_ref / o_ref: (1, tn, C) VMEM tiles.
    # Elementwise add in native dtype; cast the (f32) embedding tile to x's dtype
    # so bf16 activations stay bf16 through the store path.
    o_ref[...] = x_ref[...] + pe_ref[...].astype(o_ref.dtype)


def _pick_seq_tile(N, C, itemsize, vmem_budget_bytes=8 * 1024 * 1024):
    """Largest sequence tile that divides N, is a multiple of 8 (sublane rule),
    and keeps the double-buffered x / pos / out blocks under the VMEM budget."""
    if N <= 8:
        return N
    best = None
    for tn in range(8, N + 1, 8):
        if N % tn != 0:
            continue
        # 3 arrays (x, pe, out) * 2 pipeline buffers * tile bytes
        if 3 * 2 * tn * C * itemsize <= vmem_budget_bytes:
            best = tn
    if best is None:
        # Either N is not 8-divisible (only the full-extent block is legal) or
        # even tn=8 exceeds the budget (huge C) -> fall back conservatively.
        best = 8 if N % 8 == 0 else N
    return best


def add_position_embs(x, pos_emb):
    """x: (B, N, C), pos_emb: (1, max_len, C) with max_len >= N.
    Returns x + pos_emb[:, :N, :] (same semantics as the PyTorch module)."""
    assert x.ndim == 3, "Input tensor must be 3-dimensional"
    B, N, C = x.shape
    assert pos_emb.ndim == 3 and pos_emb.shape[0] == 1 and pos_emb.shape[2] == C
    assert pos_emb.shape[1] >= N, "sequence length exceeds max_len"

    # Cheap XLA slice outside the kernel so the kernel sees exactly (1, N, C).
    pe = jax.lax.slice(pos_emb, (0, 0, 0), (1, N, C))

    tn = _pick_seq_tile(N, C, jnp.dtype(x.dtype).itemsize)
    num_seq_tiles = N // tn

    # Seq-tile is the *outer* grid axis, batch the inner one: the pos-emb block
    # index (0, j, 0) is constant across the inner batch loop, so Pallas does not
    # re-fetch the embedding tile for every batch element.
    grid = (num_seq_tiles, B)

    return pl.pallas_call(
        add_pos_embs_kernel,
        out_shape=jax.ShapeDtypeStruct((B, N, C), x.dtype),
        grid=grid,
        in_specs=[
            pl.BlockSpec((1, tn, C), lambda j, b: (b, j, 0)),  # x tile
            pl.BlockSpec((1, tn, C), lambda j, b: (0, j, 0)),  # pos-emb tile (batch-broadcast)
        ],
        out_specs=pl.BlockSpec((1, tn, C), lambda j, b: (b, j, 0)),
        compiler_params=pltpu.CompilerParams(
            dimension_semantics=("parallel", "parallel"),  # both axes independent -> v7x megacore
            vmem_limit_bytes=32 * 1024 * 1024,             # explicit, safe on v5e/v6e/v7x
        ),
    )(x, pe)


def reference_forward(x, pos_emb):
    seq_len = x.shape[1]
    return x + pos_emb[:, :seq_len, :]


if __name__ == "__main__":
    key = jax.random.PRNGKey(0)
    kx, kp, kx2, kp2 = jax.random.split(key, 4)

    # Small demo shapes. C is kept a multiple of 128 so output stores are lane-dense
    # (the module itself places no constraint on C).
    B, N, C, max_len = 2, 8, 128, 64
    x = jax.random.normal(kx, (B, N, C), jnp.float32)
    pos_emb = jax.random.normal(kp, (1, max_len, C), jnp.float32) * 0.02  # nn.init.normal_(std=0.02)

    out = add_position_embs(x, pos_emb)
    out = jax.block_until_ready(out)
    ref = reference_forward(x, pos_emb)
    assert out.shape == (B, N, C)
    assert jnp.allclose(out, ref, rtol=1e-6, atol=1e-6), float(jnp.max(jnp.abs(out - ref)))

    # Second check: ViT-style odd sequence length (N=197) exercises the
    # full-extent-block fallback (N not a multiple of 8).
    B2, N2, C2, max_len2 = 1, 197, 256, 512
    x2 = jax.random.normal(kx2, (B2, N2, C2), jnp.float32)
    pos_emb2 = jax.random.normal(kp2, (1, max_len2, C2), jnp.float32) * 0.02
    out2 = jax.block_until_ready(add_position_embs(x2, pos_emb2))
    ref2 = reference_forward(x2, pos_emb2)
    assert out2.shape == (B2, N2, C2)
    assert jnp.allclose(out2, ref2, rtol=1e-6, atol=1e-6), float(jnp.max(jnp.abs(out2 - ref2)))

    print("KERNEL_OK")
</pallas_src>

<mosaic_0001>
module attributes {stable_mosaic.version = 11 : i64} {
  func.func @add_pos_embs_kernel(%arg0: i32, %arg1: i32, %arg2: memref<1x8x128xf32, #tpu.memory_space<vmem>>, %arg3: memref<1x8x128xf32, #tpu.memory_space<vmem>>, %arg4: memref<1x8x128xf32, #tpu.memory_space<vmem>>) attributes {dimension_semantics = [#tpu.dimension_semantics<parallel>, #tpu.dimension_semantics<parallel>], iteration_bounds = array<i64: 1, 2>, scalar_prefetch = 0 : i64, scratch_operands = 0 : i64, tpu.core_type = #tpu.core_type<tc>, window_params = [{transform_indices = @transform_0, window_bounds = array<i64: 1, 8, 128>}, {transform_indices = @transform_1, window_bounds = array<i64: 1, 8, 128>}, {transform_indices = @transform_2, window_bounds = array<i64: 1, 8, 128>}]} {
    %c0 = arith.constant 0 : index
    %c0_0 = arith.constant 0 : index
    %c0_1 = arith.constant 0 : index
    %0 = vector.load %arg2[%c0, %c0_0, %c0_1] : memref<1x8x128xf32, #tpu.memory_space<vmem>>, vector<1x8x128xf32>
    %c0_2 = arith.constant 0 : index
    %c0_3 = arith.constant 0 : index
    %c0_4 = arith.constant 0 : index
    %1 = vector.load %arg3[%c0_2, %c0_3, %c0_4] : memref<1x8x128xf32, #tpu.memory_space<vmem>>, vector<1x8x128xf32>
    %2 = arith.addf %0, %1 : vector<1x8x128xf32>
    %c0_5 = arith.constant 0 : index
    %c0_6 = arith.constant 0 : index
    %c0_7 = arith.constant 0 : index
    %3 = vector.load %arg4[%c0_5, %c0_6, %c0_7] : memref<1x8x128xf32, #tpu.memory_space<vmem>>, vector<1x8x128xf32>
    tpu.vector_store %arg4[%c0_5, %c0_6, %c0_7], %2 {strides = array<i32>} : memref<1x8x128xf32, #tpu.memory_space<vmem>>, vector<1x8x128xf32>,
    return
  }
  func.func @transform_0(%arg0: i32, %arg1: i32) -> (i32, i32, i32) {
    %c0_i32 = arith.constant 0 : i32
    %c0_i32_0 = arith.constant 0 : i32
    return %arg1, %arg0, %c0_i32 : i32, i32, i32
  }
  func.func @transform_1(%arg0: i32, %arg1: i32) -> (i32, i32, i32) {
    %c0_i32 = arith.constant 0 : i32
    %c0_i32_0 = arith.constant 0 : i32
    %c0_i32_1 = arith.constant 0 : i32
    return %c0_i32, %arg0, %c0_i32_0 : i32, i32, i32
  }
  func.func @transform_2(%arg0: i32, %arg1: i32) -> (i32, i32, i32) {
    %c0_i32 = arith.constant 0 : i32
    %c0_i32_0 = arith.constant 0 : i32
    return %arg1, %arg0, %c0_i32 : i32, i32, i32
  }
}

</mosaic_0001>

<bundles_post_ra>
// kernel: tpu_custom_call.1
= control target key start
LH: loop header
LB: loop body
LE: loop exit
PB: predicated region body
PF: predicated region fallthrough
CT: control target
= control target key end

     0   :  { %7 = vsyncpa [#allocation3], 0  ;;  %s714_s0 = inlined_call_operand.hbm [shape: f32[2,8,128], index: 0, kind: input, shape index: {}]   ;;  %s715_s1 = inlined_call_operand.hbm [shape: f32[1,8,128], index: 1, kind: input, shape index: {}]   ;;  %s716_s2 = inlined_call_operand.hbm [shape: f32[2,8,128], index: 2, kind: output, shape index: {}]  }
   0x1   :  { %9 = vsyncpa [#allocation3 + $0x1], 0 }
   0x2   :  { %10 = vsyncpa [#allocation6], 0 }
   0x3   :  { %11 = vsyncpa [#allocation4], 0 }
   0x4   :  { %13 = vsyncpa [#allocation4 + $0x1], 0  ;;  %s565_s9 = smov 0   ;;  %s567_s10 = smov 0  }
   0x5   :  { %s569_s11 = smov 0   ;;  %s571_s12 = smov 0  }
   0x6   :  { %s573_s13 = smov 0   ;;  %s575_s14 = smov 0  }
   0x7 LB: > { %s313_s15 = sadd.s32 4294967295, %s547_s14   ;;  %s314_s16 = sadd.s32 4294967294, %s547_s14   ;;  %s547_s14 = sphi %s575_s14, %s19_s14   ;;  %s543_s13 = sphi %s573_s13, %s728_s13   ;;  %s539_s12 = sphi %s571_s12, %s727_s12   ;;  %s535_s11 = sphi %s569_s11, %s726_s11   ;;  %s531_s10 = sphi %s567_s10, %s725_s10   ;;  %s527_s9 = sphi %s565_s9, %s724_s9  }
   0x8   : > { %p53_p0 = scmp.ne.s32.totalorder %s531_s10, %s527_s9  ;;  %p599_p1 = scmp.eq.s32.totalorder %s313_s15, 0 }
   0x9   : > { %p603_p2 = scmp.eq.s32.totalorder %s313_s15, 1  ;;  %p111_p3 = scmp.eq.s32.totalorder %s314_s16, 1 }
   0xa   : > { %p609_p4 = por %p599_p1, %p53_p0  ;;  %p315_p5 = scmp.ge.s32.totalorder %s547_s14, 1 }
   0xb   : > { %p614_p6 = por %p111_p3, %p53_p0  ;;  %p118_p7 = scmp.lt.s32.totalorder %s547_s14, 3 }
   0xc   : > { %s132_s23 = sshll.u32 %s715_s1, 4  ;;  %p317_p9 = scmp.ge.s32.totalorder %s547_s14, 2  ;;  %s133_s23 = int_to_ptr.hbm [resolvable:$true] %s132_s23 }
   0xd   : > { %p622_p8 = pnand %p315_p5, %p118_p7  ;;  %s549_s25 = smov [#allocation5]  }
   0xe   : > { %s134_s26 = sshll.u32 %s549_s25, 4  ;;  %s28_s27 = sadd.s32 1, %s543_s13  ;;  %s135_s26 = int_to_ptr.vmem [resolvable:$true] %s134_s26 }
   0xf   : > { %p336_p10 = pneg %p622_p8  ;;  %p29_p12 = scmp.ge.s32.totalorder %s28_s27, 2 }
  0x10   : > { %s40_s28 = sadd.s32 1, %s535_s11  ;;  %p47_p13 = scmp.ne.s32.totalorder %s535_s11, %s531_s10 }
  0x11   : > { %p337_p11 = pnand %p336_p10, %p599_p1  ;;  %p48_p0 = scmp.eq.s32.totalorder %s547_s14, 0 }
  0x12   : > { %s730_s27 = smov (%p29_p12, %s28_s27), 0  ;;  %p644_p5 = por %p603_p2, %p47_p13 }
  0x13   : > { %339 = dma.hbm_to_vmem [thread:$0]  (!%p337_p11), %s133_s23, 128, %s135_s26, [#allocation6]  }
  0x14   : > { %p638_p3 = por %p48_p0, %p47_p13  ;;  %s35_s3 = ssub.s32 %s543_s13, %s730_s27 }
  0x15   : > { %p349_p7 = scmp.lt.s32.totalorder %s547_s14, 2  ;;  %p38_p10 = scmp.eq.s32.totalorder %s35_s3, 0 }
  0x16   : > { %s145_s4 = sand.u32 1, %s535_s11   ;;  %s319_s7 = sshll.u32 %s543_s13, 3 }
  0x17   : > { %s318_s5 = sshll.u32 %s145_s4, 3  ;;  %s154_s16 = scalar_lea.hbm %s714_s0, %s319_s7 }
  0x18   : > { %s653_s6 = scalar_select %p38_p10, %s535_s11, %s40_s28  }
  0x19   : > { %s149_s21 = scalar_lea.vmem [#allocation2], %s318_s5  ;;  %s156_s18 = sshll.u32 %s154_s16, 4  ;;  %s157_s18 = int_to_ptr.hbm [resolvable:$true] %s156_s18 }
  0x1a   : > { %s158_s22 = sshll.u32 %s149_s21, 4  ;;  %p341_p2 = pnand %p349_p7, %p638_p3  ;;  %s159_s22 = int_to_ptr.vmem [resolvable:$true] %s158_s22 }
  0x1b   : > { %s146_s23 = scalar_lea.sflag [#allocation3], %s145_s4  ;;  %167 = sbr.rel (%p622_p8) target bundleno = 50 (0x32), region = 28 }
  0x1c   : > { %343 = dma.hbm_to_vmem [thread:$0]  (!%p341_p2), %s157_s18, 128, %s159_s22, %s146_s23  }
  0x1d   : > { %s664_s25 = sand.u32 (!%p622_p8), 1, %s531_s10  }
  0x1e   : > { %s321_s26 = sshll.u32 (!%p622_p8), %s664_s25, 3  ;;  %s170_s28 = scalar_lea.sflag (!%p622_p8), [#allocation3], %s664_s25 }
  0x1f   : > { %s173_s3 = scalar_lea.vmem (!%p622_p8), [#allocation2], %s321_s26 }
  0x20   : > { %514 = dma.done.wait (%p609_p4), %s170_s28, 128  }
  0x21   : > { %516 = vsyncadd (%p609_p4), %s170_s28, 4294967168 }
  0x22   : > { %518 = dma.done.wait (%p599_p1), [#allocation6], 128  }
  0x23   : > { %520 = vsyncadd (%p599_p1), [#allocation6], 4294967168  ;;  %s325_s24 = sshll.u32 %s539_s12, 3  ;;  %s199_s7 = scalar_lea.vmem [#allocation7], %s321_s26  ;;  %v200_v0 = vld [vmem:[%s173_s3] sm:$0xff]  ;;  %v201_v1 = vld [vmem:[#allocation5] sm:$0xff] }
  0x24   : > { %s216_s5 = scalar_lea.hbm %s716_s2, %s325_s24  ;;  %s218_s8 = sshll.u32 %s199_s7, 4  ;;  %v202_v2 = vadd.f32 %v201_v1, %v200_v0  ;;  %s219_s8 = int_to_ptr.vmem [resolvable:$true] %s218_s8 }
  0x25   : > { %s220_s15 = sshll.u32 %s216_s5, 4  ;;  %s205_s19 = scalar_lea.sflag [#allocation4], %s664_s25  ;;  %s221_s15 = int_to_ptr.hbm [resolvable:$true] %s220_s15 }
  0x26   : > { %203 = vst [vmem:[%s199_s7] sm:$0xff] %v202_v2  ;;  %s475_s17 = sshra.s32 %s221_s15, 4  ;;  %s481_s22 = scalar_lea.hbm %s716_s2, 16  ;;  %s476_s17 = int_to_ptr.hbm [resolvable:$true] %s475_s17 }
  0x27   : > { %s477_s16 = scalar_lea.hbm %s476_s17, 8  ;;  %p482_p11 = scmp.lt.s32.totalorder %s476_s17, %s716_s2 }
  0x28   : > { %p478_p1 = scmp.ne.s32.totalorder %s476_s17, %s477_s16  ;;  %p483_p12 = scmp.lt.s32.totalorder %s481_s22, %s477_s16 }
  0x2a   : > { %p479_p4 = pnand %p478_p1, %p644_p5  ;;  %p484_p13 = por %p483_p12, %p482_p11 }
  0x2c   : > { %p480_p8 = pneg %p479_p4 }
  0x2e   : > { %p485_p0 = pnand %p484_p13, %p480_p8 }
  0x30   : > { %488 = shalt.err (!%p485_p0)
}
  0x31   : > { %334 = dma.vmem_to_hbm [thread:$0]  (%p644_p5), %s219_s8, 128, %s221_s15, %s205_s19  }
  0x32 PF: > { %s232_s25 = sand.u32 1, %s527_s9   ;;  %p345_p3 = pnand %p317_p9, %p614_p6 }
  0x33   : > { %s233_s26 = scalar_lea.sflag [#allocation4], %s232_s25 }
  0x34   : > { %p346_p7 = pneg %p345_p3 }
  0x36   : > { %522 = dma.done.wait (%p346_p7), %s233_s26, 128  }
  0x37   : > { %524 = vsyncadd (%p346_p7), %s233_s26, 4294967168  ;;  %s19_s14 = sadd.s32 1, %s547_s14   ;;  %s724_s9 = smov %s531_s10 }
  0x38   : > { %p16_p10 = scmp.ge.s32.totalorder %s19_s14, 4   ;;  %s725_s10 = smov %s535_s11 }
  0x39   : > { %s726_s11 = smov %s653_s6  ;;  %s727_s12 = smov %s543_s13 }
  0x3a   : > { %s728_s13 = smov %s730_s27  ;;  %18 = sbr.rel (!%p16_p10) target bundleno = 7 (0x7), region = 78 }
  0x3f   :  { %239 = vsyncpa [#allocation3], 1 }
  0x40   :  { %241 = vsyncpa [#allocation3 + $0x1], 1 }
  0x41   :  { %242 = vsyncpa [#allocation6], 1 }
  0x42   :  { %243 = vsyncpa [#allocation4], 1 }
  0x43   :  { %245 = vsyncpa [#allocation4 + $0x1], 1 }

</bundles_post_ra>
